<compile_context>
chip_gen: v6e
topology: v6e:2x2x1
jax: 0.10.0
libtpu: 0.0.40
codegen_flags: <defaults>
</compile_context>

<pallas_src>
import jax
import jax.numpy as jnp
from jax.experimental import pallas as pl
from jax.experimental.pallas import tpu as pltpu

EMBED_DIM = 32            # word2vec embedding dim (small synthetic)
H1, H3, H2 = 100, 60, 30  # hidden_units1 / hidden_units3 / hidden_units2
LANE = 128                # lane-padded width for all hidden/output dims
LEAKY_SLOPE = 0.01        # nn.LeakyReLU default
TM_MAX = 256              # max row tile (sublane multiple)


def _leaky(x):
    return jnp.where(x > 0, x, LEAKY_SLOPE * x)


def _mlp_kernel(x_ref, w1_ref, b1_ref, w2_ref, b2_ref, w3_ref, b3_ref, o_ref):
    # Fused: Linear->LeakyReLU->Linear->LeakyReLU->Linear->LeakyReLU.
    # All hidden/output widths are 128 lanes (zero-padded), so every matmul
    # and the final store are full-width / unmasked.  Dropout is identity
    # at inference time.
    x = x_ref[...]
    h = jnp.dot(x, w1_ref[...], preferred_element_type=jnp.float32) + b1_ref[...]
    h = _leaky(h)
    h = jnp.dot(h, w2_ref[...], preferred_element_type=jnp.float32) + b2_ref[...]
    h = _leaky(h)
    h = jnp.dot(h, w3_ref[...], preferred_element_type=jnp.float32) + b3_ref[...]
    h = _leaky(h)
    o_ref[...] = h.astype(o_ref.dtype)


def _pick_row_tile(n):
    """Large tile to amortize per-grid-step overhead, but keep >=2 grid steps
    when there are enough rows so both v7x TensorCores get work."""
    half = ((pl.cdiv(n, 2) + 7) // 8) * 8   # ~n/2 rounded up to sublane mult.
    return min(TM_MAX, max(8, half))


def full_conn_pallas(x, params):
    """x: [N, EMBED_DIM] f32 -> [N, H2] f32 via the fused Pallas MLP kernel."""
    w1, b1, w2, b2, w3, b3 = params
    n = x.shape[0]
    tm = _pick_row_tile(n)
    n_pad = pl.cdiv(n, tm) * tm
    if n_pad != n:
        x = jnp.pad(x, ((0, n_pad - n), (0, 0)))

    out = pl.pallas_call(
        _mlp_kernel,
        out_shape=jax.ShapeDtypeStruct((n_pad, LANE), jnp.float32),
        grid_spec=pl.GridSpec(
            grid=(n_pad // tm,),
            in_specs=[
                pl.BlockSpec((tm, EMBED_DIM), lambda i: (i, 0)),
                pl.BlockSpec((EMBED_DIM, LANE), lambda i: (0, 0)),
                pl.BlockSpec((1, LANE), lambda i: (0, 0)),
                pl.BlockSpec((LANE, LANE), lambda i: (0, 0)),
                pl.BlockSpec((1, LANE), lambda i: (0, 0)),
                pl.BlockSpec((LANE, LANE), lambda i: (0, 0)),
                pl.BlockSpec((1, LANE), lambda i: (0, 0)),
            ],
            out_specs=pl.BlockSpec((tm, LANE), lambda i: (i, 0)),
        ),
        compiler_params=pltpu.CompilerParams(
            dimension_semantics=("parallel",)),
    )(x, w1, b1, w2, b2, w3, b3)
    # drop padded rows and padded (zero) output lanes
    return out[:n, :H2]


def xavier_normal(key, shape):
    fan_in, fan_out = shape
    std = jnp.sqrt(2.0 / (fan_in + fan_out))
    return std * jax.random.normal(key, shape, dtype=jnp.float32)


def _pad_to(a, shape):
    return jnp.pad(a, [(0, t - s) for s, t in zip(a.shape, shape)])


def make_params(key):
    """Deterministic init mirroring featureExtractor.init_weights():
    weights xavier_normal, biases uniform(-0.1, -0.1) == constant -0.1.
    Weights/biases are zero-padded to 128 lanes so the kernel is full-width;
    the padded columns/rows contribute exactly zero to the valid outputs."""
    k1, k2, k3 = jax.random.split(key, 3)
    w1 = _pad_to(xavier_normal(k1, (EMBED_DIM, H1)), (EMBED_DIM, LANE))
    w2 = _pad_to(xavier_normal(k2, (H1, H3)), (LANE, LANE))
    w3 = _pad_to(xavier_normal(k3, (H3, H2)), (LANE, LANE))
    b1 = _pad_to(jnp.full((1, H1), -0.1, jnp.float32), (1, LANE))
    b2 = _pad_to(jnp.full((1, H3), -0.1, jnp.float32), (1, LANE))
    b3 = _pad_to(jnp.full((1, H2), -0.1, jnp.float32), (1, LANE))
    return (w1, b1, w2, b2, w3, b3)


class FeatureExtractorJAX:
    """JAX/Pallas port of featureExtractor (inference; Dropout is identity).
    All fullConn invocations of a forward() are batched into one pallas_call."""
    # TODO(synk): PyTorch applies Dropout(0.1) in training mode; not modeled here.

    def __init__(self, word2vecE, word2vecC, key):
        assert word2vecE.shape[1] == word2vecC.shape[1] == EMBED_DIM
        self.embE = jnp.asarray(word2vecE, jnp.float32)
        self.embC = jnp.asarray(word2vecC, jnp.float32)
        self.params = make_params(key)

    @staticmethod
    def _text_rows(emb_table, idx):
        return emb_table[idx].reshape(-1, EMBED_DIM)          # (bs*s, D)

    @staticmethod
    def _emo_rows(emb_table, idx):
        return jnp.sum(emb_table[idx], axis=1)                # (bs, D)

    def _run_batched(self, segments):
        """Concatenate [n_i, D] segments, run the fused MLP ONCE, split back."""
        sizes = [s.shape[0] for s in segments]
        y = full_conn_pallas(jnp.concatenate(segments, axis=0), self.params)
        outs, off = [], 0
        for sz in sizes:
            outs.append(y[off:off + sz])
            off += sz
        return outs

    def forward(self, textE=None, emoE=None, textC=None, emoC=None,
                textEC=None, emoEC=None, textCE=None, emoCE=None, train=None):
        if train == 'False':
            bsC, sC = textC.shape
            y_text, y_emo = self._run_batched([
                self._text_rows(self.embC, textC),
                self._emo_rows(self.embC, emoC),
            ])
            return (y_text.reshape(bsC, sC, H2), y_emo.reshape(bsC, 1, H2))
        if train == 'True':
            bsE = textE.shape[0]
            bsC = textC.shape[0]
            bsEC = textEC.shape[0]
            bsCE = textCE.shape[0]
            segs = [
                self._text_rows(self.embE, textE),
                self._text_rows(self.embC, textC),
                self._text_rows(self.embE, textEC),
                self._text_rows(self.embC, textCE),
                self._emo_rows(self.embE, emoE),
                self._emo_rows(self.embC, emoC),
                self._emo_rows(self.embE, emoEC),
                self._emo_rows(self.embC, emoCE),
            ]
            (yE, yC, yEC, yCE, eE, eC, eEC, eCE) = self._run_batched(segs)
            return (yE.reshape(bsE, -1, H2),
                    yC.reshape(bsC, -1, H2),
                    yEC.reshape(bsEC, -1, H2),
                    yCE.reshape(bsCE, -1, H2),
                    eE.reshape(bsE, 1, H2),
                    eC.reshape(bsC, 1, H2),
                    eEC.reshape(bsEC, 1, H2),
                    eCE.reshape(bsCE, 1, H2))
        # train not in {'True','False'} -> PyTorch module falls through / returns None
        return None


if __name__ == "__main__":
    key = jax.random.PRNGKey(0)
    k_wE, k_wC, k_p, k_t, k_e = jax.random.split(key, 5)

    vocabE, vocabC = 40, 50
    word2vecE = jax.random.normal(k_wE, (vocabE, EMBED_DIM), jnp.float32)
    word2vecC = jax.random.normal(k_wC, (vocabC, EMBED_DIM), jnp.float32)

    model = FeatureExtractorJAX(word2vecE, word2vecC, k_p)

    bs, seq, emo_len = 2, 8, 4
    textC = jax.random.randint(k_t, (bs, seq), 0, vocabC, jnp.int32)
    emoC = jax.random.randint(k_e, (bs, emo_len), 0, vocabC, jnp.int32)

    # inference path (one pallas_call for text + emo)
    outC, emoC_out = model.forward(textC=textC, emoC=emoC, train='False')
    jax.block_until_ready((outC, emoC_out))
    assert outC.shape == (bs, seq, H2)
    assert emoC_out.shape == (bs, 1, H2)

    # correctness check vs a pure-JAX reference of the same (padded) params
    w1, b1, w2, b2, w3, b3 = model.params

    def ref_mlp(x):
        h = _leaky(x @ w1[:, :H1] + b1[:, :H1])
        h = _leaky(h @ w2[:H1, :H3] + b2[:, :H3])
        h = _leaky(h @ w3[:H3, :H2] + b3[:, :H2])
        return h

    text_rows = model._text_rows(model.embC, textC)
    ref_out = ref_mlp(text_rows).reshape(bs, seq, H2)
    assert jnp.allclose(outC, ref_out, atol=1e-5, rtol=1e-5), "mismatch vs reference"

    # training branch (all 8 MLP invocations fused into one pallas_call)
    outs = model.forward(textE=textC, emoE=emoC, textC=textC, emoC=emoC,
                         textEC=textC, emoEC=emoC, textCE=textC, emoCE=emoC,
                         train='True')
    jax.block_until_ready(outs)
    assert len(outs) == 8
    assert outs[0].shape == (bs, seq, H2)
    assert outs[4].shape == (bs, 1, H2)

    print("KERNEL_OK")
</pallas_src>

<mosaic_0001>
module attributes {stable_mosaic.version = 11 : i64} {
  func.func @_mlp_kernel(%arg0: i32, %arg1: memref<16x32xf32, #tpu.memory_space<vmem>>, %arg2: memref<32x128xf32, #tpu.memory_space<vmem>>, %arg3: memref<1x128xf32, #tpu.memory_space<vmem>>, %arg4: memref<128x128xf32, #tpu.memory_space<vmem>>, %arg5: memref<1x128xf32, #tpu.memory_space<vmem>>, %arg6: memref<128x128xf32, #tpu.memory_space<vmem>>, %arg7: memref<1x128xf32, #tpu.memory_space<vmem>>, %arg8: memref<16x128xf32, #tpu.memory_space<vmem>>) attributes {dimension_semantics = [#tpu.dimension_semantics<parallel>], iteration_bounds = array<i64: 2>, scalar_prefetch = 0 : i64, scratch_operands = 0 : i64, tpu.core_type = #tpu.core_type<tc>, window_params = [{transform_indices = @transform_0, window_bounds = array<i64: 16, 32>}, {pipeline_mode = #tpu.pipeline_mode<synchronous>, transform_indices = @transform_1, window_bounds = array<i64: 32, 128>}, {pipeline_mode = #tpu.pipeline_mode<synchronous>, transform_indices = @transform_2, window_bounds = array<i64: 1, 128>}, {pipeline_mode = #tpu.pipeline_mode<synchronous>, transform_indices = @transform_3, window_bounds = array<i64: 128, 128>}, {pipeline_mode = #tpu.pipeline_mode<synchronous>, transform_indices = @transform_4, window_bounds = array<i64: 1, 128>}, {pipeline_mode = #tpu.pipeline_mode<synchronous>, transform_indices = @transform_5, window_bounds = array<i64: 128, 128>}, {pipeline_mode = #tpu.pipeline_mode<synchronous>, transform_indices = @transform_6, window_bounds = array<i64: 1, 128>}, {transform_indices = @transform_7, window_bounds = array<i64: 16, 128>}]} {
    %c0 = arith.constant 0 : index
    %c0_0 = arith.constant 0 : index
    %0 = vector.load %arg1[%c0, %c0_0] : memref<16x32xf32, #tpu.memory_space<vmem>>, vector<16x32xf32>
    %c0_1 = arith.constant 0 : index
    %c0_2 = arith.constant 0 : index
    %1 = vector.load %arg2[%c0_1, %c0_2] : memref<32x128xf32, #tpu.memory_space<vmem>>, vector<32x128xf32>
    %cst = arith.constant dense<0.000000e+00> : vector<16x128xf32>
    %2 = tpu.matmul %0, %1, %cst {dimension_numbers = #tpu.dot_dimension_numbers<[1], [0], [0], [1], [0, 0, 1, 1], [], []>} : vector<16x32xf32>, vector<32x128xf32>, vector<16x128xf32> -> vector<16x128xf32>
    %c0_3 = arith.constant 0 : index
    %c0_4 = arith.constant 0 : index
    %3 = vector.load %arg3[%c0_3, %c0_4] : memref<1x128xf32, #tpu.memory_space<vmem>>, vector<1x128xf32>
    %4 = vector.broadcast %3 : vector<1x128xf32> to vector<16x128xf32>
    %5 = arith.addf %2, %4 : vector<16x128xf32>
    %cst_5 = arith.constant 0.000000e+00 : f32
    %6 = vector.broadcast %cst_5 : f32 to vector<16x128xf32>
    %7 = arith.cmpf ogt, %5, %6 : vector<16x128xf32>
    %cst_6 = arith.constant 0.00999999977 : f32
    %8 = vector.broadcast %cst_6 : f32 to vector<16x128xf32>
    %9 = arith.mulf %8, %5 : vector<16x128xf32>
    %10 = arith.select %7, %5, %9 : vector<16x128xi1>, vector<16x128xf32>
    %c0_7 = arith.constant 0 : index
    %c0_8 = arith.constant 0 : index
    %11 = vector.load %arg4[%c0_7, %c0_8] : memref<128x128xf32, #tpu.memory_space<vmem>>, vector<128x128xf32>
    %cst_9 = arith.constant dense<0.000000e+00> : vector<16x128xf32>
    %12 = tpu.matmul %10, %11, %cst_9 {dimension_numbers = #tpu.dot_dimension_numbers<[1], [0], [0], [1], [0, 0, 1, 1], [], []>} : vector<16x128xf32>, vector<128x128xf32>, vector<16x128xf32> -> vector<16x128xf32>
    %c0_10 = arith.constant 0 : index
    %c0_11 = arith.constant 0 : index
    %13 = vector.load %arg5[%c0_10, %c0_11] : memref<1x128xf32, #tpu.memory_space<vmem>>, vector<1x128xf32>
    %14 = vector.broadcast %13 : vector<1x128xf32> to vector<16x128xf32>
    %15 = arith.addf %12, %14 : vector<16x128xf32>
    %cst_12 = arith.constant 0.000000e+00 : f32
    %16 = vector.broadcast %cst_12 : f32 to vector<16x128xf32>
    %17 = arith.cmpf ogt, %15, %16 : vector<16x128xf32>
    %cst_13 = arith.constant 0.00999999977 : f32
    %18 = vector.broadcast %cst_13 : f32 to vector<16x128xf32>
    %19 = arith.mulf %18, %15 : vector<16x128xf32>
    %20 = arith.select %17, %15, %19 : vector<16x128xi1>, vector<16x128xf32>
    %c0_14 = arith.constant 0 : index
    %c0_15 = arith.constant 0 : index
    %21 = vector.load %arg6[%c0_14, %c0_15] : memref<128x128xf32, #tpu.memory_space<vmem>>, vector<128x128xf32>
    %cst_16 = arith.constant dense<0.000000e+00> : vector<16x128xf32>
    %22 = tpu.matmul %20, %21, %cst_16 {dimension_numbers = #tpu.dot_dimension_numbers<[1], [0], [0], [1], [0, 0, 1, 1], [], []>} : vector<16x128xf32>, vector<128x128xf32>, vector<16x128xf32> -> vector<16x128xf32>
    %c0_17 = arith.constant 0 : index
    %c0_18 = arith.constant 0 : index
    %23 = vector.load %arg7[%c0_17, %c0_18] : memref<1x128xf32, #tpu.memory_space<vmem>>, vector<1x128xf32>
    %24 = vector.broadcast %23 : vector<1x128xf32> to vector<16x128xf32>
    %25 = arith.addf %22, %24 : vector<16x128xf32>
    %cst_19 = arith.constant 0.000000e+00 : f32
    %26 = vector.broadcast %cst_19 : f32 to vector<16x128xf32>
    %27 = arith.cmpf ogt, %25, %26 : vector<16x128xf32>
    %cst_20 = arith.constant 0.00999999977 : f32
    %28 = vector.broadcast %cst_20 : f32 to vector<16x128xf32>
    %29 = arith.mulf %28, %25 : vector<16x128xf32>
    %30 = arith.select %27, %25, %29 : vector<16x128xi1>, vector<16x128xf32>
    %c0_21 = arith.constant 0 : index
    %c0_22 = arith.constant 0 : index
    %31 = vector.load %arg8[%c0_21, %c0_22] : memref<16x128xf32, #tpu.memory_space<vmem>>, vector<16x128xf32>
    tpu.vector_store %arg8[%c0_21, %c0_22], %30 {strides = array<i32>} : memref<16x128xf32, #tpu.memory_space<vmem>>, vector<16x128xf32>,
    return
  }
  func.func @transform_0(%arg0: i32) -> (i32, i32) {
    %c0_i32 = arith.constant 0 : i32
    %c0_i32_0 = arith.constant 0 : i32
    return %arg0, %c0_i32 : i32, i32
  }
  func.func @transform_1(%arg0: i32) -> (i32, i32) {
    %c0_i32 = arith.constant 0 : i32
    %c0_i32_0 = arith.constant 0 : i32
    %c0_i32_1 = arith.constant 0 : i32
    return %c0_i32, %c0_i32_0 : i32, i32
  }
  func.func @transform_2(%arg0: i32) -> (i32, i32) {
    %c0_i32 = arith.constant 0 : i32
    %c0_i32_0 = arith.constant 0 : i32
    %c0_i32_1 = arith.constant 0 : i32
    return %c0_i32, %c0_i32_0 : i32, i32
  }
  func.func @transform_3(%arg0: i32) -> (i32, i32) {
    %c0_i32 = arith.constant 0 : i32
    %c0_i32_0 = arith.constant 0 : i32
    %c0_i32_1 = arith.constant 0 : i32
    return %c0_i32, %c0_i32_0 : i32, i32
  }
  func.func @transform_4(%arg0: i32) -> (i32, i32) {
    %c0_i32 = arith.constant 0 : i32
    %c0_i32_0 = arith.constant 0 : i32
    %c0_i32_1 = arith.constant 0 : i32
    return %c0_i32, %c0_i32_0 : i32, i32
  }
  func.func @transform_5(%arg0: i32) -> (i32, i32) {
    %c0_i32 = arith.constant 0 : i32
    %c0_i32_0 = arith.constant 0 : i32
    %c0_i32_1 = arith.constant 0 : i32
    return %c0_i32, %c0_i32_0 : i32, i32
  }
  func.func @transform_6(%arg0: i32) -> (i32, i32) {
    %c0_i32 = arith.constant 0 : i32
    %c0_i32_0 = arith.constant 0 : i32
    %c0_i32_1 = arith.constant 0 : i32
    return %c0_i32, %c0_i32_0 : i32, i32
  }
  func.func @transform_7(%arg0: i32) -> (i32, i32) {
    %c0_i32 = arith.constant 0 : i32
    %c0_i32_0 = arith.constant 0 : i32
    return %arg0, %c0_i32 : i32, i32
  }
}

</mosaic_0001>

<bundles_post_ra>
// kernel: tpu_custom_call.1
= control target key start
LH: loop header
LB: loop body
LE: loop exit
PB: predicated region body
PF: predicated region fallthrough
CT: control target
= control target key end

     0   :  { %s1457_s0 = inlined_call_operand.hbm [shape: f32[32,32], index: 0, kind: input, shape index: {}]   ;;  %s1458_s1 = inlined_call_operand.hbm [shape: f32[32,128], index: 1, kind: input, shape index: {}]   ;;  %s1459_s2 = inlined_call_operand.vmem [shape: f32[1,128], index: 2, kind: input, shape index: {}]   ;;  %s1460_s3 = inlined_call_operand.hbm [shape: f32[128,128], index: 3, kind: input, shape index: {}]   ;;  %s1461_s4 = inlined_call_operand.vmem [shape: f32[1,128], index: 4, kind: input, shape index: {}]   ;;  %s1462_s5 = inlined_call_operand.hbm [shape: f32[128,128], index: 5, kind: input, shape index: {}]   ;;  %s1463_s6 = inlined_call_operand.vmem [shape: f32[1,128], index: 6, kind: input, shape index: {}]   ;;  %s1464_s7 = inlined_call_operand.hbm [shape: f32[32,128], index: 7, kind: output, shape index: {}]  }
   0x1   :  { %1471 = sst [smem:[#allocation15_spill]] %s1458_s1 }
   0x2   :  { %12 = vsyncpa [#allocation3], 0 }
   0x3   :  { %14 = vsyncpa [#allocation3 + $0x1], 0 }
   0x4   :  { %15 = vsyncpa [#allocation6], 0 }
   0x5   :  { %16 = vsyncpa [#allocation9], 0 }
   0x6   :  { %17 = vsyncpa [#allocation4], 0 }
   0x7   :  { %19 = vsyncpa [#allocation4 + $0x1], 0  ;;  %s1230_s24 = smov 0   ;;  %s1232_s25 = smov 0  }
   0x8   :  { %s1234_s26 = smov 0   ;;  %s1236_s27 = smov 0  }
   0x9 LB: > { %s1251_s28 = sadd.s32 4294967295, %s1179_s27   ;;  %s770_s29 = sadd.s32 4294967294, %s1179_s27   ;;  %s1179_s27 = sphi %s1236_s27, %s1493_s27   ;;  %s1175_s26 = sphi %s1234_s26, %s1492_s26   ;;  %s1171_s25 = sphi %s1232_s25, %s1491_s25   ;;  %s1167_s24 = sphi %s1230_s24, %s1490_s24  }
   0xa   : > { %p45_p0 = scmp.ne.s32.totalorder %s1171_s25, %s1167_s24  ;;  %p1465_p1 = scmp.eq.s32.totalorder %s1251_s28, 0 }
   0xb   : > { %p195_p2 = scmp.eq.s32.totalorder %s1251_s28, 1  ;;  %p201_p3 = scmp.eq.s32.totalorder %s770_s29, 1 }
   0xc   : > { %p1260_p4 = por %p1465_p1, %p45_p0  ;;  %p771_p5 = scmp.ge.s32.totalorder %s1179_s27, 1 }
   0xd   : > { %p1265_p6 = por %p201_p3, %p45_p0  ;;  %p208_p7 = scmp.lt.s32.totalorder %s1179_s27, 3 }
   0xe   : > { %s1472_s30 = scalar_select %p1260_p4, 1, 0 }
   0xf   : > { %s1473_s8 = scalar_select %p1265_p6, 1, 0 }
  0x10   : > { %p1270_p8 = pnand %p771_p5, %p208_p7  ;;  %s1181_s10 = smov [#allocation5]  }
  0x11   : > { %s220_s11 = sshll.u32 %s1181_s10, 4  ;;  %s1182_s13 = smov [#allocation7]   ;;  %s221_s11 = int_to_ptr.vmem [resolvable:$true] %s220_s11 }
  0x12   : > { %s1474_s9 = scalar_select %p1270_p8, 1, 0 }
  0x13   : > { %p936_p9 = pneg %p1270_p8  ;;  %s236_s14 = sshll.u32 %s1182_s13, 4  ;;  %s237_s14 = int_to_ptr.vmem [resolvable:$true] %s236_s14 }
  0x14   : > { %s1183_s15 = smov [#allocation8]   ;;  %s1012_s17 = scalar_lea.vmem %s221_s11, 512 }
  0x15   : > { %p1279_p11 = pnand %p936_p9, %p1465_p1  ;;  %s252_s16 = sshll.u32 %s1183_s15, 4  ;;  %s253_s16 = int_to_ptr.vmem [resolvable:$true] %s252_s16 }
  0x16   : > { %p1013_p13 = scmp.ne.s32.totalorder %s221_s11, %s1012_s17  ;;  %p1020_p5 = scmp.lt.s32.totalorder %s221_s11, %s221_s11 }
  0x17   : > { %p1003_p12 = pneg %p1279_p11  ;;  %p1021_p7 = scmp.lt.s32.totalorder %s1012_s17, %s1012_s17 }
  0x19   : > { %p1015_p0 = pnand %p1013_p13, %p1003_p12  ;;  %p1022_p9 = por %p1021_p7, %p1020_p5 }
  0x1b   : > { %p1016_p3 = pneg %p1015_p0 }
  0x1d   : > { %p1023_p10 = pnand %p1022_p9, %p1016_p3 }
  0x1f   : > { %1026 = shalt.err (!%p1023_p10)
}
  0x20   : > { %s1466_s18 = smov 128   ;;  %s1467_s19 = smov 8  }
  0x21   : > { %s1476_s1 = sld [smem:[#allocation15_spill]]  ;;  %s1038_s22 = scalar_lea.vmem %s237_s14, 2048 }
  0x22   : > { %p1039_p13 = scmp.ne.s32.totalorder %s237_s14, %s1038_s22  ;;  %p1046_p3 = scmp.lt.s32.totalorder %s237_s14, %s237_s14 }
  0x23   : > { %p1047_p10 = scmp.lt.s32.totalorder %s1038_s22, %s1038_s22 }
  0x24   : > { %p1041_p0 = pnand %p1039_p13, %p1003_p12 }
  0x25   : > { %p1048_p7 = por %p1047_p10, %p1046_p3 }
  0x26   : > { %p1042_p5 = pneg %p1041_p0 }
  0x27   : > { %939 = dma.hbm_to_vmem [thread:$0]  (!%p1279_p11), %s1476_s1, 512, %s221_s11, [#allocation6], %s1466_s18, %s1466_s18, %s1467_s19  }
  0x28   : > { %p1049_p9 = pnand %p1048_p7, %p1042_p5 }
  0x2a   : > { %1052 = shalt.err (!%p1049_p9)
}
  0x2b   : > { %942 = dma.hbm_to_vmem [thread:$0]  (!%p1279_p11), %s1460_s3, 2048, %s237_s14, [#allocation6], %s1466_s18, %s1466_s18, %s1467_s19  }
  0x2c   : > { %s1064_s10 = scalar_lea.vmem %s253_s16, 2048  ;;  %p1072_p3 = scmp.lt.s32.totalorder %s253_s16, %s253_s16 }
  0x2d   : > { %p1065_p1 = scmp.ne.s32.totalorder %s253_s16, %s1064_s10  ;;  %p1073_p5 = scmp.lt.s32.totalorder %s1064_s10, %s1064_s10 }
  0x2f   : > { %p1067_p13 = pnand %p1065_p1, %p1003_p12  ;;  %p1074_p10 = por %p1073_p5, %p1072_p3 }
  0x31   : > { %p1068_p0 = pneg %p1067_p13 }
  0x33   : > { %p1075_p7 = pnand %p1074_p10, %p1068_p0 }
  0x35   : > { %1078 = shalt.err (!%p1075_p7)
}
  0x36   : > { %945 = dma.hbm_to_vmem [thread:$0]  (!%p1279_p11), %s1462_s5, 2048, %s253_s16, [#allocation9], %s1466_s18, %s1466_s18, %s1467_s19  }
  0x37   : > { %s1319_s14 = sadd.s32 1, %s1179_s27   ;;  %s32_s15 = sadd.s32 1, %s1175_s26 }
  0x38   : > { %s29_s12 = ssub.s32 %s1179_s27, %s1319_s14  ;;  %p39_p12 = scmp.ne.s32.totalorder %s1175_s26, %s1171_s25 }
  0x39   : > { %p30_p1 = scmp.eq.s32.totalorder %s29_s12, 0  ;;  %p40_p9 = scmp.eq.s32.totalorder %s1179_s27, 0 }
  0x3a   : > { %p957_p13 = scmp.lt.s32.totalorder %s1179_s27, 2  ;;  %p1333_p3 = por %p195_p2, %p39_p12 }
  0x3b   : > { %s1329_s17 = scalar_select %p30_p1, %s1175_s26, %s32_s15  }
  0x3c   : > { %p41_p0 = por %p40_p9, %p39_p12  ;;  %s269_s21 = sand.u32 1, %s1175_s26  }
  0x3d   : > { %s1477_s20 = scalar_select %p1333_p3, 1, 0 }
  0x3e   : > { %s795_s22 = sshll.u32 %s1179_s27, 8  ;;  %s776_s16 = sshll.u32 %s269_s21, 4 }
  0x3f   : > { %s1342_s10 = scalar_lea.hbm %s1457_s0, %s795_s22  ;;  %s273_s11 = scalar_lea.vmem [#allocation2], %s776_s16 }
  0x40   : > { %s280_s13 = sshll.u32 %s273_s11, 4  ;;  %p1344_p11 = pnand %p957_p13, %p41_p0  ;;  %s1348_s13 = int_to_ptr.vmem [resolvable:$true] %s280_s13 }
  0x41   : > { %s1350_s15 = scalar_lea.sflag [#allocation3], %s269_s21  ;;  %s1079_s18 = scalar_lea.hbm %s1342_s10, 256 }
  0x42   : > { %p1080_p2 = scmp.ne.s32.totalorder %s1342_s10, %s1079_s18  ;;  %p1081_p5 = pneg %p1344_p11 }
  0x43   : > { %s1084_s16 = scalar_lea.hbm %s1457_s0, 512  ;;  %p1085_p1 = scmp.lt.s32.totalorder %s1342_s10, %s1457_s0 }
  0x44   : > { %p1082_p10 = pnand %p1081_p5, %p1080_p2  ;;  %p1086_p12 = scmp.lt.s32.totalorder %s1084_s16, %s1079_s18 }
  0x46   : > { %p1083_p7 = pneg %p1082_p10  ;;  %p1087_p9 = por %p1086_p12, %p1085_p1 }
  0x48   : > { %p1088_p13 = pnand %p1087_p9, %p1083_p7 }
  0x4a   : > { %1091 = shalt.err (!%p1088_p13)
}
  0x4b   : > { %s1092_s21 = scalar_lea.vmem %s1348_s13, 256  ;;  %s1186_s19 = smov [#allocation2]  }
  0x4c   : > { %p1093_p0 = scmp.ne.s32.totalorder %s1348_s13, %s1092_s21  ;;  %s1097_s1 = sshll.u32 %s1186_s19, 4  ;;  %s1098_s1 = int_to_ptr.vmem [resolvable:$false] %s1097_s1 }
  0x4d   : > { %s1099_s22 = scalar_lea.vmem %s1098_s1, 512  ;;  %p1100_p10 = scmp.lt.s32.totalorder %s1348_s13, %s1098_s1 }
  0x4e   : > { %p1095_p6 = pnand %p1093_p0, %p1081_p5  ;;  %p1101_p3 = scmp.lt.s32.totalorder %s1099_s22, %s1092_s21 }
  0x50   : > { %p1096_p2 = pneg %p1095_p6  ;;  %p1102_p4 = por %p1101_p3, %p1100_p10 }
  0x52   : > { %p1103_p8 = pnand %p1102_p4, %p1096_p2 }
  0x54   : > { %1106 = shalt.err (!%p1103_p8)
}
  0x55   : > { %s1479_s18 = smov 8   ;;  %s1480_s23 = smov 128  }
  0x56   : > { %949 = dma.hbm_to_vmem [thread:$0]  (!%p1344_p11), %s1342_s10, 256, %s1348_s13, %s1350_s15, %s1480_s23, %s1480_s23, %s1479_s18  }
  0x57   : > { %p1481_p6 = scmp.ne.s32.totalorder %s1474_s9, 0 }
  0x58   : > { %s1377_s19 = sand.u32 (!%p1481_p6), 1, %s1171_s25   ;;  %p1482_p4 = scmp.ne.s32.totalorder (!%p1481_p6), %s1472_s30, 0 }
  0x59   : > { %292 = sbr.rel (%p1481_p6) target bundleno = 727 (0x2d7), region = 48  ;;  %s780_s1 = sshll.u32 (!%p1481_p6), %s1377_s19, 4 }
  0x5a   : > { %s295_s16 = scalar_lea.sflag (!%p1481_p6), [#allocation3], %s1377_s19  ;;  %s298_s12 = scalar_lea.vmem (!%p1481_p6), [#allocation2], %s780_s1 }
  0x5e   : > { %1150 = dma.done.wait (%p1482_p4), %s295_s16, 256  }
  0x5f   : > { %1152 = vsyncadd (%p1482_p4), %s295_s16, 4294967040  ;;  %p1483_p8 = scmp.eq.s32.totalorder %s1251_s28, 0 }
  0x61   : > { %1154 = dma.done.wait (%p1483_p8), [#allocation6], 2560   ;;  %p1484_p3 = pmov %p1483_p8 }
  0x63   : > { %1156 = vsyncadd (%p1484_p3), [#allocation6], 4294964736  ;;  %p1485_p11 = pmov %p1484_p3 }
  0x64   : > { %p1486_p5 = pmov %p1484_p3 }
  0x65   : > { %1158 = dma.done.wait (%p1485_p11), [#allocation9], 2048  }
  0x66   : > { %1160 = vsyncadd (%p1486_p5), [#allocation9], 4294965248  ;;  %vm356_vm0 = vcmask 261120   ;;  %v348_v0 = vld [vmem:[#allocation5 + $0x18] sm:$0xff]  ;;  %v347_v1 = vld [vmem:[#allocation5 + $0x10] sm:$0xff]  ;;  %s340_s11 = scalar_lea.vmem [#allocation10], %s780_s1 }
  0x67   : > { %839 = vmatprep.subr.mxu0 %v348_v0  ;;  %v343_v2 = vld [vmem:[%s298_s12] sm:$0xff]  ;;  %v346_v3 = vld [vmem:[#allocation5 + $0x8] sm:$0xff]  ;;  %v459_v4 = vld [vmem:[#allocation7 + $0x78] sm:$0xff]  ;;  %s668_s21 = sshll.u32 %s340_s11, 4  ;;  %s796_s22 = sshll.u32 %s1251_s28, 8  ;;  %s1409_s21 = int_to_ptr.vmem [resolvable:$true] %s668_s21 }
  0x68   : > { %840 = vmatpush3.msra.mxu0 %v348_v0  ;;  %847 = vmatprep.mubr.msk.f32.mxu0 %vm356_vm0, %v343_v2  ;;  %v458_v5 = vld [vmem:[#allocation7 + $0x70] sm:$0xff]  ;;  %v345_v6 = vld [vmem:[#allocation5] sm:$0xff]  ;;  %v457_v7 = vld [vmem:[#allocation7 + $0x68] sm:$0xff]  ;;  %s1414_s16 = scalar_lea.hbm %s1464_s7, %s796_s22  ;;  %s655_s28 = scalar_lea.sflag [#allocation4], %s1377_s19 }
  0x69   : > { %841 = vmatprep.subr.mxu0 %v347_v1  ;;  %850 = vmatprep.subr.mxu1 %v459_v4  ;;  %v344_v8 = vld [vmem:[%s298_s12 + $0x8] sm:$0xff]  ;;  %v456_v9 = vld [vmem:[#allocation7 + $0x60] sm:$0xff]  ;;  %v454_v11 = vld [vmem:[#allocation7 + $0x50] sm:$0xff]  ;;  %s1107_s1 = scalar_lea.vmem %s1409_s21, 256  ;;  %p1487_p1 = scmp.ne.s32.totalorder %s1477_s20, 0 }
  0x6a   : > { %842 = vmatpush3.msra.mxu0 %v347_v1  ;;  %851 = vmatpush3.msra.mxu1 %v459_v4  ;;  %v455_v10 = vld [vmem:[#allocation7 + $0x58] sm:$0xff]  ;;  %v453_v12 = vld [vmem:[#allocation7 + $0x48] sm:$0xff]  ;;  %v452_v13 = vld [vmem:[#allocation7 + $0x40] sm:$0xff]  ;;  %p1108_p7 = scmp.ne.s32.totalorder %s1409_s21, %s1107_s1  ;;  %s1187_s12 = smov [#allocation10]  }
  0x6b   : > { %843 = vmatprep.subr.mxu0 %v346_v3  ;;  %852 = vmatprep.subr.mxu1 %v458_v5  ;;  %v451_v14 = vld [vmem:[#allocation7 + $0x38] sm:$0xff]  ;;  %v450_v15 = vld [vmem:[#allocation7 + $0x30] sm:$0xff]  ;;  %v449_v16 = vld [vmem:[#allocation7 + $0x28] sm:$0xff]  ;;  %s1111_s30 = sshll.u32 %s1187_s12, 4  ;;  %s1112_s30 = int_to_ptr.vmem [resolvable:$false] %s1111_s30 }
  0x6c   : > { %844 = vmatpush3.msra.mxu0 %v346_v3  ;;  %853 = vmatpush3.msra.mxu1 %v458_v5  ;;  %v448_v17 = vld [vmem:[#allocation7 + $0x20] sm:$0xff]  ;;  %v447_v18 = vld [vmem:[#allocation7 + $0x18] sm:$0xff]  ;;  %v446_v19 = vld [vmem:[#allocation7 + $0x10] sm:$0xff]  ;;  %p1109_p12 = pnand %p1108_p7, %p1487_p1  ;;  %s1113_s9 = scalar_lea.vmem %s1112_s30, 512 }
  0x6d   : > { %845 = vmatprep.subr.mxu0 %v345_v6  ;;  %854 = vmatprep.subr.mxu1 %v457_v7  ;;  %v445_v20 = vld [vmem:[#allocation7 + $0x8] sm:$0xff]  ;;  %v444_v21 = vld [vmem:[#allocation7] sm:$0xff]  ;;  %v563_v22 = vld [vmem:[#allocation8 + $0x78] sm:$0xff]  ;;  %p1114_p13 = scmp.lt.s32.totalorder %s1409_s21, %s1112_s30  ;;  %p1115_p0 = scmp.lt.s32.totalorder %s1113_s9, %s1107_s1 }
  0x6e   : > { %846 = vmatpush3.msra.mxu0 %v345_v6  ;;  %855 = vmatpush3.msra.mxu1 %v457_v7  ;;  %v562_v23 = vld [vmem:[#allocation8 + $0x70] sm:$0xff]  ;;  %v561_v24 = vld [vmem:[#allocation8 + $0x68] sm:$0xff]  ;;  %v560_v25 = vld [vmem:[#allocation8 + $0x60] sm:$0xff]  ;;  %p1110_p9 = pneg %p1109_p12 }
  0x6f   : > { %848 = vmatmul.mubr.msk.f32.vlgmr.msra.gmra.mxu0 %vm356_vm0, %v344_v8  ;;  %856 = vmatprep.subr.mxu1 %v456_v9  ;;  %v559_v26 = vld [vmem:[#allocation8 + $0x58] sm:$0xff]  ;;  %v558_v27 = vld [vmem:[#allocation8 + $0x50] sm:$0xff]  ;;  %v557_v28 = vld [vmem:[#allocation8 + $0x48] sm:$0xff]  ;;  %p1116_p2 = por %p1115_p0, %p1114_p13 }
  0x70   : > { %857 = vmatpush3.msra.mxu1 %v456_v9  ;;  %885 = vmatprep.subr.mxu0 %v563_v22  ;;  %v556_v29 = vld [vmem:[#allocation8 + $0x40] sm:$0xff]  ;;  %v555_v30 = vld [vmem:[#allocation8 + $0x38] sm:$0xff]  ;;  %v554_v31 = vld [vmem:[#allocation8 + $0x30] sm:$0xff] }
  0x71   : > { %858 = vmatprep.subr.mxu1 %v455_v10  ;;  %886 = vmatpush3.msra.mxu0 %v563_v22  ;;  %v553_v32 = vld [vmem:[#allocation8 + $0x28] sm:$0xff]  ;;  %v552_v33 = vld [vmem:[#allocation8 + $0x20] sm:$0xff]  ;;  %v551_v43 = vld [vmem:[#allocation8 + $0x18] sm:$0xff]  ;;  %p1117_p10 = pnand %p1116_p2, %p1110_p9 }
  0x72   : > { %859 = vmatpush3.msra.mxu1 %v455_v10  ;;  %887 = vmatprep.subr.mxu0 %v562_v23  ;;  %v785_v34 = vld [vmem:[%s1459_s2] ss:$0 sm:$0xff]  ;;  %v550_v44 = vld [vmem:[#allocation8 + $0x10] sm:$0xff]  ;;  %v549_v45 = vld [vmem:[#allocation8 + $0x8] sm:$0xff] }
  0x73   : > { %860 = vmatprep.subr.mxu1 %v454_v11  ;;  %888 = vmatpush3.msra.mxu0 %v562_v23  ;;  %v548_v46 = vld [vmem:[#allocation8] sm:$0xff] }
  0x74   : > { %861 = vmatpush3.msra.mxu1 %v454_v11  ;;  %889 = vmatprep.subr.mxu0 %v561_v24  ;;  %v788_v47 = vld [vmem:[%s1461_s4] ss:$0 sm:$0xff] }
  0x75   : > { %862 = vmatprep.subr.mxu1 %v453_v12  ;;  %890 = vmatpush3.msra.mxu0 %v561_v24  ;;  %v789_v56 = vld [vmem:[%s1463_s6] ss:$0 sm:$0xff] }
  0x76   : > { %863 = vmatpush3.msra.mxu1 %v453_v12  ;;  %891 = vmatprep.subr.mxu0 %v560_v25 }
  0x77   : > { %864 = vmatprep.subr.mxu1 %v452_v13  ;;  %892 = vmatpush3.msra.mxu0 %v560_v25 }
  0x78   : > { %865 = vmatpush3.msra.mxu1 %v452_v13  ;;  %893 = vmatprep.subr.mxu0 %v559_v26 }
  0x79   : > { %866 = vmatprep.subr.mxu1 %v451_v14  ;;  %894 = vmatpush3.msra.mxu0 %v559_v26 }
  0x7a   : > { %867 = vmatpush3.msra.mxu1 %v451_v14  ;;  %895 = vmatprep.subr.mxu0 %v558_v27 }
  0x7b   : > { %868 = vmatprep.subr.mxu1 %v450_v15  ;;  %896 = vmatpush3.msra.mxu0 %v558_v27 }
  0x7c   : > { %869 = vmatpush3.msra.mxu1 %v450_v15  ;;  %897 = vmatprep.subr.mxu0 %v557_v28 }
  0x7d   : > { %870 = vmatprep.subr.mxu1 %v449_v16  ;;  %898 = vmatpush3.msra.mxu0 %v557_v28 }
  0x7e   : > { %871 = vmatpush3.msra.mxu1 %v449_v16  ;;  %899 = vmatprep.subr.mxu0 %v556_v29 }
  0x7f   : > { %872 = vmatprep.subr.mxu1 %v448_v17  ;;  %900 = vmatpush3.msra.mxu0 %v556_v29 }
  0x80   : > { %873 = vmatpush3.msra.mxu1 %v448_v17  ;;  %901 = vmatprep.subr.mxu0 %v555_v30 }
  0x81   : > { %874 = vmatprep.subr.mxu1 %v447_v18  ;;  %902 = vmatpush3.msra.mxu0 %v555_v30 }
  0x82   : > { %875 = vmatpush3.msra.mxu1 %v447_v18  ;;  %903 = vmatprep.subr.mxu0 %v554_v31 }
  0x83   : > { %876 = vmatprep.subr.mxu1 %v446_v19  ;;  %904 = vmatpush3.msra.mxu0 %v554_v31 }
  0x84   : > { %877 = vmatpush3.msra.mxu1 %v446_v19  ;;  %905 = vmatprep.subr.mxu0 %v553_v32 }
  0x85   : > { %878 = vmatprep.subr.mxu1 %v445_v20  ;;  %906 = vmatpush3.msra.mxu0 %v553_v32 }
  0x86   : > { %879 = vmatpush3.msra.mxu1 %v445_v20  ;;  %907 = vmatprep.subr.mxu0 %v552_v33 }
  0x87   : > { %880 = vmatprep.subr.mxu1 %v444_v21  ;;  %908 = vmatpush3.msra.mxu0 %v552_v33 }
  0x88   : > { %881 = vmatpush3.msra.mxu1 %v444_v21  ;;  %909 = vmatprep.subr.mxu0 %v551_v43 }
  0x89   : > { %910 = vmatpush3.msra.mxu0 %v551_v43 }
  0x8a   : > { %911 = vmatprep.subr.mxu0 %v550_v44 }
  0x8b   : > { %912 = vmatpush3.msra.mxu0 %v550_v44 }
  0x8c   : > { %913 = vmatprep.subr.mxu0 %v549_v45 }
  0x8d   : > { %914 = vmatpush3.msra.mxu0 %v549_v45 }
  0x8e   : > { %915 = vmatprep.subr.mxu0 %v548_v46 }
  0x8f   : > { %916 = vmatpush3.msra.mxu0 %v548_v46 }
 0x12f   : > { %v849_v35 = vpop.f32.mrf.mxu0 }
 0x130   : > { %v435_v36 = vadd.f32 %v849_v35, %v785_v34 }
 0x131   : > { %v429_v37 = vpop.f32.mrf.mxu0 }
 0x132   : > { %v430_v38 = vadd.f32 %v785_v34, %v429_v37  ;;  %v441_v39 = vmul.f32 0.01, %v435_v36  ;;  %vm439_vm2 = vcmp.gt.f32.partialorder %v435_v36, 0.0 }
 0x134   : > { %vm438_vm1 = vcmp.gt.f32.partialorder %v430_v38, 0.0  ;;  %v440_v40 = vmul.f32 0.01, %v430_v38  ;;  %v443_v42 = vsel %vm439_vm2, %v435_v36, %v441_v39 }
 0x136   : > { %v442_v41 = vsel %vm438_vm1, %v430_v38, %v440_v40 }
 0x137   : > { %882 = vmatprep.mubr.f32.mxu1 %v442_v41 }
 0x138   : > { %883 = vmatmul.mubr.f32.vlgmr.msra.gmra.mxu1 %v443_v42 }
 0x1f8   : > { %v884_v48 = vpop.f32.mrf.mxu1 }
 0x1f9   : > { %v539_v49 = vadd.f32 %v884_v48, %v788_v47 }
 0x1fa   : > { %v533_v50 = vpop.f32.mrf.mxu1 }
 0x1fb   : > { %v534_v51 = vadd.f32 %v788_v47, %v533_v50  ;;  %v545_v52 = vmul.f32 0.01, %v539_v49  ;;  %vm543_vm3 = vcmp.gt.f32.partialorder %v539_v49, 0.0 }
 0x1fd   : > { %v544_v53 = vmul.f32 0.01, %v534_v51  ;;  %vm542_vm4 = vcmp.gt.f32.partialorder %v534_v51, 0.0  ;;  %v547_v55 = vsel %vm543_vm3, %v539_v49, %v545_v52 }
 0x1ff   : > { %v546_v54 = vsel %vm542_vm4, %v534_v51, %v544_v53 }
 0x200   : > { %917 = vmatprep.mubr.f32.mxu0 %v546_v54 }
 0x201   : > { %918 = vmatmul.mubr.f32.vlgmr.msra.gmra.mxu0 %v547_v55 }
 0x2c1   : > { %v919_v57 = vpop.f32.mrf.mxu0 }
 0x2c2   : > { %v643_v58 = vadd.f32 %v919_v57, %v789_v56 }
 0x2c3   : > { %v637_v59 = vpop.f32.mrf.mxu0 }
 0x2c4   : > { %vm647_vm5 = vcmp.gt.f32.partialorder %v643_v58, 0.0  ;;  %v649_v60 = vmul.f32 0.01, %v643_v58  ;;  %v638_v61 = vadd.f32 %v789_v56, %v637_v59 }
 0x2c6   : > { %v651_v62 = vsel %vm647_vm5, %v643_v58, %v649_v60  ;;  %vm646_vm6 = vcmp.gt.f32.partialorder %v638_v61, 0.0  ;;  %v648_v63 = vmul.f32 0.01, %v638_v61 }
 0x2c7   : > { %653 = vst [vmem:[%s340_s11 + $0x8] sm:$0xff] %v651_v62 }
 0x2c8   : > { %v650_v0 = vsel %vm646_vm6, %v638_v61, %v648_v63 }
 0x2c9   : > { %652 = vst [vmem:[%s340_s11] sm:$0xff] %v650_v0 }
 0x2ca   : > { %1120 = shalt.err (!%p1117_p10)
}
 0x2cb   : > { %s1121_s10 = scalar_lea.hbm %s1414_s16, 256  ;;  %s1125_s29 = scalar_lea.hbm %s1464_s7, 512 }
 0x2cc   : > { %p1122_p6 = scmp.ne.s32.totalorder %s1414_s16, %s1121_s10  ;;  %p1126_p3 = scmp.lt.s32.totalorder %s1414_s16, %s1464_s7 }
 0x2cd   : > { %p1127_p11 = scmp.lt.s32.totalorder %s1125_s29, %s1121_s10 }
 0x2ce   : > { %p1123_p4 = pnand %p1122_p6, %p1487_p1 }
 0x2cf   : > { %p1128_p5 = por %p1127_p11, %p1126_p3 }
 0x2d0   : > { %p1124_p8 = pneg %p1123_p4 }
 0x2d2   : > { %p1129_p7 = pnand %p1128_p5, %p1124_p8 }
 0x2d4   : > { %1132 = shalt.err (!%p1129_p7)
}
 0x2d5   : > { %s1188_s18 = smov 128   ;;  %s1189_s23 = smov 8  }
 0x2d6   : > { %934 = dma.vmem_to_hbm [thread:$0]  (%p1487_p1), %s1409_s21, 256, %s1414_s16, %s655_s28, %s1188_s18, %s1188_s18, %s1189_s23  }
 0x2d7 PF: > { %s683_s1 = sand.u32 1, %s1167_s24   ;;  %p1488_p12 = scmp.ne.s32.totalorder %s1473_s8, 0 }
 0x2d8   : > { %p1489_p9 = scmp.ge.s32.totalorder %s1179_s27, 2  ;;  %s684_s12 = scalar_lea.sflag [#allocation4], %s683_s1 }
 0x2da   : > { %p951_p13 = pnand %p1489_p9, %p1488_p12 }
 0x2dc   : > { %p952_p0 = pneg %p951_p13 }
 0x2de   : > { %1162 = dma.done.wait (%p952_p0), %s684_s12, 256  }
 0x2df   : > { %1164 = vsyncadd (%p952_p0), %s684_s12, 4294967040  ;;  %p22_p2 = scmp.ge.s32.totalorder %s1319_s14, 4   ;;  %s1490_s24 = smov %s1171_s25 }
 0x2e0   : > { %s1491_s25 = smov %s1175_s26  ;;  %s1492_s26 = smov %s1329_s17 }
 0x2e1   : > { %s1493_s27 = smov %s1319_s14  ;;  %24 = sbr.rel (!%p22_p2) target bundleno = 9 (0x9), region = 105 }
 0x2e6   :  { %689 = vsyncpa [#allocation3], 1 }
 0x2e7   :  { %691 = vsyncpa [#allocation3 + $0x1], 1 }
 0x2e8   :  { %692 = vsyncpa [#allocation6], 1 }
 0x2e9   :  { %693 = vsyncpa [#allocation9], 1 }
 0x2ea   :  { %694 = vsyncpa [#allocation4], 1 }
 0x2eb   :  { %696 = vsyncpa [#allocation4 + $0x1], 1 }

</bundles_post_ra>
